<compile_context>
chip_gen: v6e
topology: v6e:2x2x1
jax: 0.10.0
libtpu: 0.0.40
codegen_flags: <defaults>
</compile_context>

<pallas_src>
import math
import jax
import jax.numpy as jnp
from jax import lax
from jax.experimental import pallas as pl
from jax.experimental.pallas import tpu as pltpu

INPUT_SIZE = 16
HIDDEN = 8


def _bilstm_kernel(x_ref,       # (T*B, 32)  rows are [x_t | x_{T-1-t}], f32
                   w_in_ref,    # (32, 64)   input weights, cols [i|f|o|g], each [fwd|bwd]
                   b_in_ref,    # (1, 64)    folded ih+hh biases, same column layout
                   w_hh_ref,    # (16, 64)   block-diagonal recurrent weights, same layout
                   out_ref):    # (T, B, 2*HIDDEN) f32
    T, B, H2 = out_ref.shape
    Hd = H2 // 2

    # ---- hoisted input projection: ONE MXU call for both directions, all steps.
    gates_in = (jnp.dot(x_ref[...], w_in_ref[...],
                        preferred_element_type=jnp.float32)
                + b_in_ref[...])                           # (T*B, 64)

    w_hh = w_hh_ref[...]                                   # loaded once, outside loop

    h = jnp.zeros((B, H2), jnp.float32)                    # [h_f | h_b]
    c = jnp.zeros((B, H2), jnp.float32)                    # [c_f | c_b]

    hs = []
    # ---- fused fwd+bwd recurrence, fully unrolled (T static, tiny).
    # TODO(synk): switch to lax.fori_loop(..., unroll=k) and B>=8 sublane tiling
    # if T/B ever grow beyond toy sizes.
    for s in range(T):
        g_pre = gates_in[s * B:(s + 1) * B, :]             # (B, 64), static row slice
        gates = g_pre + jnp.dot(h, w_hh, preferred_element_type=jnp.float32)
        sig = jax.nn.sigmoid(gates[:, :6 * Hd])            # i,f,o both dirs: 1 EUP dispatch
        gg = jnp.tanh(gates[:, 6 * Hd:])                    # g both dirs:     1 EUP dispatch
        i = sig[:, :2 * Hd]
        f = sig[:, 2 * Hd:4 * Hd]
        o = sig[:, 4 * Hd:]
        c = f * c + i * gg
        h = o * jnp.tanh(c)                                 # tanh(c) both dirs: 1 EUP dispatch
        hs.append(h)

    # ---- epilogue: assemble in registers, single full-array store.
    # out[t, :, :H] = h_f produced at step t ; out[t, :, H:] = h_b produced at step T-1-t
    lane = lax.broadcasted_iota(jnp.int32, (B, H2), 1)
    is_fwd = lane < Hd
    rows = [jnp.where(is_fwd, hs[t], hs[T - 1 - t]) for t in range(T)]
    out_ref[...] = jnp.stack(rows, axis=0)


def _pack_cols(mat_f, mat_b):
    """Pack per-gate column blocks of fwd/bwd matrices.

    mat_f, mat_b: (4H, K) in PyTorch gate-row order [i, f, g, o].
    Returns (K, 8H) with column layout [i_f i_b | f_f f_b | o_f o_b | g_f g_b]
    (each sub-block HIDDEN wide).
    """
    H = HIDDEN
    blocks = []
    for g in (0, 1, 3, 2):                  # emit order i, f, o, g
        blocks.append(mat_f[g * H:(g + 1) * H, :].T)
        blocks.append(mat_b[g * H:(g + 1) * H, :].T)
    return jnp.concatenate(blocks, axis=1)


def pack_params(params):
    """One-time weight packing (do NOT call per forward pass)."""
    (wih_f, whh_f, bih_f, bhh_f, wih_b, whh_b, bih_b, bhh_b) = params
    zF = jnp.zeros((4 * HIDDEN, INPUT_SIZE), jnp.float32)
    zH = jnp.zeros((4 * HIDDEN, HIDDEN), jnp.float32)
    # (32, 64): rows 0..15 act on x_t (fwd columns), rows 16..31 on x_{T-1-t} (bwd columns)
    w_in = _pack_cols(jnp.concatenate([wih_f, zF], axis=1),
                      jnp.concatenate([zF, wih_b], axis=1))
    # (16, 64): block-diagonal -- rows 0..7 = h_f -> fwd cols, rows 8..15 = h_b -> bwd cols
    w_hh = _pack_cols(jnp.concatenate([whh_f, zH], axis=1),
                      jnp.concatenate([zH, whh_b], axis=1))
    b_in = _pack_cols((bih_f + bhh_f)[:, None], (bih_b + bhh_b)[:, None])   # (1, 64)
    return w_in, b_in, w_hh


def bilstm_pallas(x, packed):
    """x: (T, B, 16) float32. packed = pack_params(params). Returns H: (T, B, 2*HIDDEN)."""
    T, B, F = x.shape
    assert F == INPUT_SIZE
    w_in, b_in, w_hh = packed

    # Fold the bwd direction's time reversal into the input packing; fuses with
    # the feature concat at the XLA level (pre-flattened so no in-kernel reshape).
    x_cat = jnp.concatenate([x.reshape(T * B, F), x[::-1].reshape(T * B, F)],
                            axis=1)                                      # (T*B, 32)

    vmem = pl.BlockSpec(memory_space=pltpu.MemorySpace.VMEM)

    # Rough advisory cost so XLA can schedule around this tiny latency-bound call.
    flops = 2 * (T * B) * (2 * F) * (8 * HIDDEN) + 2 * T * B * (2 * HIDDEN) * (8 * HIDDEN)
    transcendentals = T * B * (10 * HIDDEN)
    bytes_accessed = 4 * (T * B * 2 * F + 2 * F * 8 * HIDDEN + 8 * HIDDEN
                          + 2 * HIDDEN * 8 * HIDDEN + T * B * 2 * HIDDEN)
    cost = pl.CostEstimate(flops=flops, transcendentals=transcendentals,
                           bytes_accessed=bytes_accessed)

    return pl.pallas_call(
        _bilstm_kernel,
        out_shape=jax.ShapeDtypeStruct((T, B, 2 * HIDDEN), jnp.float32),
        in_specs=[vmem] * 4,
        out_specs=vmem,
        cost_estimate=cost,
    )(x_cat, w_in, b_in, w_hh)


def feature_extractor1(seq, stat, bse, packed):
    """Matches FeatureExtractor1.forward: concat -> biLSTM -> reshape(T, -1)."""
    x = jnp.concatenate(
        [seq.astype(jnp.float32), stat.astype(jnp.float32), bse.astype(jnp.float32)],
        axis=2)
    H = bilstm_pallas(x, packed)
    return H.reshape(H.shape[0], -1)


# ---------------- pure-JAX reference (for correctness check) ----------------
def _ref_bilstm(x, params):
    (wih_f, whh_f, bih_f, bhh_f, wih_b, whh_b, bih_b, bhh_b) = params
    T, B, _ = x.shape

    def run(xs, wih, whh, bih, bhh):
        h = jnp.zeros((B, HIDDEN), jnp.float32)
        c = jnp.zeros((B, HIDDEN), jnp.float32)
        outs = []
        for t in range(T):
            g = xs[t] @ wih.T + h @ whh.T + bih + bhh
            i = jax.nn.sigmoid(g[:, 0 * HIDDEN:1 * HIDDEN])
            f = jax.nn.sigmoid(g[:, 1 * HIDDEN:2 * HIDDEN])
            gg = jnp.tanh(g[:, 2 * HIDDEN:3 * HIDDEN])
            o = jax.nn.sigmoid(g[:, 3 * HIDDEN:4 * HIDDEN])
            c = f * c + i * gg
            h = o * jnp.tanh(c)
            outs.append(h)
        return jnp.stack(outs)

    hf = run(x, wih_f, whh_f, bih_f, bhh_f)
    hb = run(x[::-1], wih_b, whh_b, bih_b, bhh_b)[::-1]
    return jnp.concatenate([hf, hb], axis=-1)


def init_params(key):
    """Deterministic init mimicking PyTorch: U(-1/sqrt(H), 1/sqrt(H))."""
    bound = 1.0 / math.sqrt(HIDDEN)
    shapes = [
        (4 * HIDDEN, INPUT_SIZE), (4 * HIDDEN, HIDDEN), (4 * HIDDEN,), (4 * HIDDEN,),  # fwd
        (4 * HIDDEN, INPUT_SIZE), (4 * HIDDEN, HIDDEN), (4 * HIDDEN,), (4 * HIDDEN,),  # bwd
    ]
    keys = jax.random.split(key, len(shapes))
    return tuple(jax.random.uniform(k, s, jnp.float32, -bound, bound)
                 for k, s in zip(keys, shapes))


if __name__ == "__main__":
    key = jax.random.PRNGKey(0)
    k_seq, k_stat, k_bse, k_par = jax.random.split(key, 4)

    T, B = 8, 2
    # feature splits summing to input_size=16
    seq = jax.random.normal(k_seq, (T, B, 8), jnp.float32)
    stat = jax.random.normal(k_stat, (T, B, 4), jnp.float32)
    bse = jax.random.normal(k_bse, (T, B, 4), jnp.float32)

    params = init_params(k_par)
    packed = pack_params(params)            # one-time weight packing, not per call

    fe = jax.jit(feature_extractor1)
    out = jax.block_until_ready(fe(seq, stat, bse, packed))

    # sanity check against pure-JAX reference (original PyTorch gate order)
    x = jnp.concatenate([seq, stat, bse], axis=2)
    ref = _ref_bilstm(x, params).reshape(T, -1)
    assert out.shape == (T, B * 2 * HIDDEN)
    assert jnp.allclose(out, ref, atol=1e-5, rtol=1e-5)

    print("KERNEL_OK")
</pallas_src>

<mosaic_0001>
module attributes {stable_mosaic.version = 11 : i64} {
  func.func @_bilstm_kernel(%arg0: memref<16x32xf32, #tpu.memory_space<vmem>>, %arg1: memref<32x64xf32, #tpu.memory_space<vmem>>, %arg2: memref<1x64xf32, #tpu.memory_space<vmem>>, %arg3: memref<16x64xf32, #tpu.memory_space<vmem>>, %arg4: memref<8x2x16xf32, #tpu.memory_space<vmem>>) attributes {dimension_semantics = [], scalar_prefetch = 0 : i64, scratch_operands = 0 : i64, tpu.core_type = #tpu.core_type<tc>} {
    %c0 = arith.constant 0 : index
    %c0_0 = arith.constant 0 : index
    %0 = vector.load %arg0[%c0, %c0_0] : memref<16x32xf32, #tpu.memory_space<vmem>>, vector<16x32xf32>
    %c0_1 = arith.constant 0 : index
    %c0_2 = arith.constant 0 : index
    %1 = vector.load %arg1[%c0_1, %c0_2] : memref<32x64xf32, #tpu.memory_space<vmem>>, vector<32x64xf32>
    %cst = arith.constant dense<0.000000e+00> : vector<16x64xf32>
    %2 = tpu.matmul %0, %1, %cst {dimension_numbers = #tpu.dot_dimension_numbers<[1], [0], [0], [1], [0, 0, 1, 1], [], []>} : vector<16x32xf32>, vector<32x64xf32>, vector<16x64xf32> -> vector<16x64xf32>
    %c0_3 = arith.constant 0 : index
    %c0_4 = arith.constant 0 : index
    %3 = vector.load %arg2[%c0_3, %c0_4] : memref<1x64xf32, #tpu.memory_space<vmem>>, vector<1x64xf32>
    %4 = vector.broadcast %3 : vector<1x64xf32> to vector<16x64xf32>
    %5 = arith.addf %2, %4 : vector<16x64xf32>
    %c0_5 = arith.constant 0 : index
    %c0_6 = arith.constant 0 : index
    %6 = vector.load %arg3[%c0_5, %c0_6] : memref<16x64xf32, #tpu.memory_space<vmem>>, vector<16x64xf32>
    %cst_7 = arith.constant 0.000000e+00 : f32
    %7 = vector.broadcast %cst_7 : f32 to vector<2x16xf32>
    %cst_8 = arith.constant 0.000000e+00 : f32
    %8 = vector.broadcast %cst_8 : f32 to vector<2x16xf32>
    %9 = vector.extract_strided_slice %5 {offsets = [0, 0], sizes = [2, 64], strides = [1, 1]} : vector<16x64xf32> to vector<2x64xf32>
    %cst_9 = arith.constant dense<0.000000e+00> : vector<2x64xf32>
    %10 = tpu.matmul %7, %6, %cst_9 {dimension_numbers = #tpu.dot_dimension_numbers<[1], [0], [0], [1], [0, 0, 1, 1], [], []>} : vector<2x16xf32>, vector<16x64xf32>, vector<2x64xf32> -> vector<2x64xf32>
    %11 = arith.addf %9, %10 : vector<2x64xf32>
    %12 = vector.extract_strided_slice %11 {offsets = [0, 0], sizes = [2, 48], strides = [1, 1]} : vector<2x64xf32> to vector<2x48xf32>
    %13 = arith.negf %12 : vector<2x48xf32>
    %14 = math.exp %13 : vector<2x48xf32>
    %cst_10 = arith.constant 1.000000e+00 : f32
    %15 = vector.broadcast %cst_10 : f32 to vector<2x48xf32>
    %16 = arith.addf %15, %14 : vector<2x48xf32>
    %17 = arith.divf %15, %16 : vector<2x48xf32>
    %18 = vector.extract_strided_slice %11 {offsets = [0, 48], sizes = [2, 16], strides = [1, 1]} : vector<2x64xf32> to vector<2x16xf32>
    %19 = math.tanh %18 : vector<2x16xf32>
    %20 = vector.extract_strided_slice %17 {offsets = [0, 0], sizes = [2, 16], strides = [1, 1]} : vector<2x48xf32> to vector<2x16xf32>
    %21 = vector.extract_strided_slice %17 {offsets = [0, 16], sizes = [2, 16], strides = [1, 1]} : vector<2x48xf32> to vector<2x16xf32>
    %22 = vector.extract_strided_slice %17 {offsets = [0, 32], sizes = [2, 16], strides = [1, 1]} : vector<2x48xf32> to vector<2x16xf32>
    %23 = arith.mulf %21, %8 : vector<2x16xf32>
    %24 = arith.mulf %20, %19 : vector<2x16xf32>
    %25 = arith.addf %23, %24 : vector<2x16xf32>
    %26 = math.tanh %25 : vector<2x16xf32>
    %27 = arith.mulf %22, %26 : vector<2x16xf32>
    %28 = vector.extract_strided_slice %5 {offsets = [2, 0], sizes = [2, 64], strides = [1, 1]} : vector<16x64xf32> to vector<2x64xf32>
    %cst_11 = arith.constant dense<0.000000e+00> : vector<2x64xf32>
    %29 = tpu.matmul %27, %6, %cst_11 {dimension_numbers = #tpu.dot_dimension_numbers<[1], [0], [0], [1], [0, 0, 1, 1], [], []>} : vector<2x16xf32>, vector<16x64xf32>, vector<2x64xf32> -> vector<2x64xf32>
    %30 = arith.addf %28, %29 : vector<2x64xf32>
    %31 = vector.extract_strided_slice %30 {offsets = [0, 0], sizes = [2, 48], strides = [1, 1]} : vector<2x64xf32> to vector<2x48xf32>
    %32 = arith.negf %31 : vector<2x48xf32>
    %33 = math.exp %32 : vector<2x48xf32>
    %cst_12 = arith.constant 1.000000e+00 : f32
    %34 = vector.broadcast %cst_12 : f32 to vector<2x48xf32>
    %35 = arith.addf %34, %33 : vector<2x48xf32>
    %36 = arith.divf %34, %35 : vector<2x48xf32>
    %37 = vector.extract_strided_slice %30 {offsets = [0, 48], sizes = [2, 16], strides = [1, 1]} : vector<2x64xf32> to vector<2x16xf32>
    %38 = math.tanh %37 : vector<2x16xf32>
    %39 = vector.extract_strided_slice %36 {offsets = [0, 0], sizes = [2, 16], strides = [1, 1]} : vector<2x48xf32> to vector<2x16xf32>
    %40 = vector.extract_strided_slice %36 {offsets = [0, 16], sizes = [2, 16], strides = [1, 1]} : vector<2x48xf32> to vector<2x16xf32>
    %41 = vector.extract_strided_slice %36 {offsets = [0, 32], sizes = [2, 16], strides = [1, 1]} : vector<2x48xf32> to vector<2x16xf32>
    %42 = arith.mulf %40, %25 : vector<2x16xf32>
    %43 = arith.mulf %39, %38 : vector<2x16xf32>
    %44 = arith.addf %42, %43 : vector<2x16xf32>
    %45 = math.tanh %44 : vector<2x16xf32>
    %46 = arith.mulf %41, %45 : vector<2x16xf32>
    %47 = vector.extract_strided_slice %5 {offsets = [4, 0], sizes = [2, 64], strides = [1, 1]} : vector<16x64xf32> to vector<2x64xf32>
    %cst_13 = arith.constant dense<0.000000e+00> : vector<2x64xf32>
    %48 = tpu.matmul %46, %6, %cst_13 {dimension_numbers = #tpu.dot_dimension_numbers<[1], [0], [0], [1], [0, 0, 1, 1], [], []>} : vector<2x16xf32>, vector<16x64xf32>, vector<2x64xf32> -> vector<2x64xf32>
    %49 = arith.addf %47, %48 : vector<2x64xf32>
    %50 = vector.extract_strided_slice %49 {offsets = [0, 0], sizes = [2, 48], strides = [1, 1]} : vector<2x64xf32> to vector<2x48xf32>
    %51 = arith.negf %50 : vector<2x48xf32>
    %52 = math.exp %51 : vector<2x48xf32>
    %cst_14 = arith.constant 1.000000e+00 : f32
    %53 = vector.broadcast %cst_14 : f32 to vector<2x48xf32>
    %54 = arith.addf %53, %52 : vector<2x48xf32>
    %55 = arith.divf %53, %54 : vector<2x48xf32>
    %56 = vector.extract_strided_slice %49 {offsets = [0, 48], sizes = [2, 16], strides = [1, 1]} : vector<2x64xf32> to vector<2x16xf32>
    %57 = math.tanh %56 : vector<2x16xf32>
    %58 = vector.extract_strided_slice %55 {offsets = [0, 0], sizes = [2, 16], strides = [1, 1]} : vector<2x48xf32> to vector<2x16xf32>
    %59 = vector.extract_strided_slice %55 {offsets = [0, 16], sizes = [2, 16], strides = [1, 1]} : vector<2x48xf32> to vector<2x16xf32>
    %60 = vector.extract_strided_slice %55 {offsets = [0, 32], sizes = [2, 16], strides = [1, 1]} : vector<2x48xf32> to vector<2x16xf32>
    %61 = arith.mulf %59, %44 : vector<2x16xf32>
    %62 = arith.mulf %58, %57 : vector<2x16xf32>
    %63 = arith.addf %61, %62 : vector<2x16xf32>
    %64 = math.tanh %63 : vector<2x16xf32>
    %65 = arith.mulf %60, %64 : vector<2x16xf32>
    %66 = vector.extract_strided_slice %5 {offsets = [6, 0], sizes = [2, 64], strides = [1, 1]} : vector<16x64xf32> to vector<2x64xf32>
    %cst_15 = arith.constant dense<0.000000e+00> : vector<2x64xf32>
    %67 = tpu.matmul %65, %6, %cst_15 {dimension_numbers = #tpu.dot_dimension_numbers<[1], [0], [0], [1], [0, 0, 1, 1], [], []>} : vector<2x16xf32>, vector<16x64xf32>, vector<2x64xf32> -> vector<2x64xf32>
    %68 = arith.addf %66, %67 : vector<2x64xf32>
    %69 = vector.extract_strided_slice %68 {offsets = [0, 0], sizes = [2, 48], strides = [1, 1]} : vector<2x64xf32> to vector<2x48xf32>
    %70 = arith.negf %69 : vector<2x48xf32>
    %71 = math.exp %70 : vector<2x48xf32>
    %cst_16 = arith.constant 1.000000e+00 : f32
    %72 = vector.broadcast %cst_16 : f32 to vector<2x48xf32>
    %73 = arith.addf %72, %71 : vector<2x48xf32>
    %74 = arith.divf %72, %73 : vector<2x48xf32>
    %75 = vector.extract_strided_slice %68 {offsets = [0, 48], sizes = [2, 16], strides = [1, 1]} : vector<2x64xf32> to vector<2x16xf32>
    %76 = math.tanh %75 : vector<2x16xf32>
    %77 = vector.extract_strided_slice %74 {offsets = [0, 0], sizes = [2, 16], strides = [1, 1]} : vector<2x48xf32> to vector<2x16xf32>
    %78 = vector.extract_strided_slice %74 {offsets = [0, 16], sizes = [2, 16], strides = [1, 1]} : vector<2x48xf32> to vector<2x16xf32>
    %79 = vector.extract_strided_slice %74 {offsets = [0, 32], sizes = [2, 16], strides = [1, 1]} : vector<2x48xf32> to vector<2x16xf32>
    %80 = arith.mulf %78, %63 : vector<2x16xf32>
    %81 = arith.mulf %77, %76 : vector<2x16xf32>
    %82 = arith.addf %80, %81 : vector<2x16xf32>
    %83 = math.tanh %82 : vector<2x16xf32>
    %84 = arith.mulf %79, %83 : vector<2x16xf32>
    %85 = vector.extract_strided_slice %5 {offsets = [8, 0], sizes = [2, 64], strides = [1, 1]} : vector<16x64xf32> to vector<2x64xf32>
    %cst_17 = arith.constant dense<0.000000e+00> : vector<2x64xf32>
    %86 = tpu.matmul %84, %6, %cst_17 {dimension_numbers = #tpu.dot_dimension_numbers<[1], [0], [0], [1], [0, 0, 1, 1], [], []>} : vector<2x16xf32>, vector<16x64xf32>, vector<2x64xf32> -> vector<2x64xf32>
    %87 = arith.addf %85, %86 : vector<2x64xf32>
    %88 = vector.extract_strided_slice %87 {offsets = [0, 0], sizes = [2, 48], strides = [1, 1]} : vector<2x64xf32> to vector<2x48xf32>
    %89 = arith.negf %88 : vector<2x48xf32>
    %90 = math.exp %89 : vector<2x48xf32>
    %cst_18 = arith.constant 1.000000e+00 : f32
    %91 = vector.broadcast %cst_18 : f32 to vector<2x48xf32>
    %92 = arith.addf %91, %90 : vector<2x48xf32>
    %93 = arith.divf %91, %92 : vector<2x48xf32>
    %94 = vector.extract_strided_slice %87 {offsets = [0, 48], sizes = [2, 16], strides = [1, 1]} : vector<2x64xf32> to vector<2x16xf32>
    %95 = math.tanh %94 : vector<2x16xf32>
    %96 = vector.extract_strided_slice %93 {offsets = [0, 0], sizes = [2, 16], strides = [1, 1]} : vector<2x48xf32> to vector<2x16xf32>
    %97 = vector.extract_strided_slice %93 {offsets = [0, 16], sizes = [2, 16], strides = [1, 1]} : vector<2x48xf32> to vector<2x16xf32>
    %98 = vector.extract_strided_slice %93 {offsets = [0, 32], sizes = [2, 16], strides = [1, 1]} : vector<2x48xf32> to vector<2x16xf32>
    %99 = arith.mulf %97, %82 : vector<2x16xf32>
    %100 = arith.mulf %96, %95 : vector<2x16xf32>
    %101 = arith.addf %99, %100 : vector<2x16xf32>
    %102 = math.tanh %101 : vector<2x16xf32>
    %103 = arith.mulf %98, %102 : vector<2x16xf32>
    %104 = vector.extract_strided_slice %5 {offsets = [10, 0], sizes = [2, 64], strides = [1, 1]} : vector<16x64xf32> to vector<2x64xf32>
    %cst_19 = arith.constant dense<0.000000e+00> : vector<2x64xf32>
    %105 = tpu.matmul %103, %6, %cst_19 {dimension_numbers = #tpu.dot_dimension_numbers<[1], [0], [0], [1], [0, 0, 1, 1], [], []>} : vector<2x16xf32>, vector<16x64xf32>, vector<2x64xf32> -> vector<2x64xf32>
    %106 = arith.addf %104, %105 : vector<2x64xf32>
    %107 = vector.extract_strided_slice %106 {offsets = [0, 0], sizes = [2, 48], strides = [1, 1]} : vector<2x64xf32> to vector<2x48xf32>
    %108 = arith.negf %107 : vector<2x48xf32>
    %109 = math.exp %108 : vector<2x48xf32>
    %cst_20 = arith.constant 1.000000e+00 : f32
    %110 = vector.broadcast %cst_20 : f32 to vector<2x48xf32>
    %111 = arith.addf %110, %109 : vector<2x48xf32>
    %112 = arith.divf %110, %111 : vector<2x48xf32>
    %113 = vector.extract_strided_slice %106 {offsets = [0, 48], sizes = [2, 16], strides = [1, 1]} : vector<2x64xf32> to vector<2x16xf32>
    %114 = math.tanh %113 : vector<2x16xf32>
    %115 = vector.extract_strided_slice %112 {offsets = [0, 0], sizes = [2, 16], strides = [1, 1]} : vector<2x48xf32> to vector<2x16xf32>
    %116 = vector.extract_strided_slice %112 {offsets = [0, 16], sizes = [2, 16], strides = [1, 1]} : vector<2x48xf32> to vector<2x16xf32>
    %117 = vector.extract_strided_slice %112 {offsets = [0, 32], sizes = [2, 16], strides = [1, 1]} : vector<2x48xf32> to vector<2x16xf32>
    %118 = arith.mulf %116, %101 : vector<2x16xf32>
    %119 = arith.mulf %115, %114 : vector<2x16xf32>
    %120 = arith.addf %118, %119 : vector<2x16xf32>
    %121 = math.tanh %120 : vector<2x16xf32>
    %122 = arith.mulf %117, %121 : vector<2x16xf32>
    %123 = vector.extract_strided_slice %5 {offsets = [12, 0], sizes = [2, 64], strides = [1, 1]} : vector<16x64xf32> to vector<2x64xf32>
    %cst_21 = arith.constant dense<0.000000e+00> : vector<2x64xf32>
    %124 = tpu.matmul %122, %6, %cst_21 {dimension_numbers = #tpu.dot_dimension_numbers<[1], [0], [0], [1], [0, 0, 1, 1], [], []>} : vector<2x16xf32>, vector<16x64xf32>, vector<2x64xf32> -> vector<2x64xf32>
    %125 = arith.addf %123, %124 : vector<2x64xf32>
    %126 = vector.extract_strided_slice %125 {offsets = [0, 0], sizes = [2, 48], strides = [1, 1]} : vector<2x64xf32> to vector<2x48xf32>
    %127 = arith.negf %126 : vector<2x48xf32>
    %128 = math.exp %127 : vector<2x48xf32>
    %cst_22 = arith.constant 1.000000e+00 : f32
    %129 = vector.broadcast %cst_22 : f32 to vector<2x48xf32>
    %130 = arith.addf %129, %128 : vector<2x48xf32>
    %131 = arith.divf %129, %130 : vector<2x48xf32>
    %132 = vector.extract_strided_slice %125 {offsets = [0, 48], sizes = [2, 16], strides = [1, 1]} : vector<2x64xf32> to vector<2x16xf32>
    %133 = math.tanh %132 : vector<2x16xf32>
    %134 = vector.extract_strided_slice %131 {offsets = [0, 0], sizes = [2, 16], strides = [1, 1]} : vector<2x48xf32> to vector<2x16xf32>
    %135 = vector.extract_strided_slice %131 {offsets = [0, 16], sizes = [2, 16], strides = [1, 1]} : vector<2x48xf32> to vector<2x16xf32>
    %136 = vector.extract_strided_slice %131 {offsets = [0, 32], sizes = [2, 16], strides = [1, 1]} : vector<2x48xf32> to vector<2x16xf32>
    %137 = arith.mulf %135, %120 : vector<2x16xf32>
    %138 = arith.mulf %134, %133 : vector<2x16xf32>
    %139 = arith.addf %137, %138 : vector<2x16xf32>
    %140 = math.tanh %139 : vector<2x16xf32>
    %141 = arith.mulf %136, %140 : vector<2x16xf32>
    %142 = vector.extract_strided_slice %5 {offsets = [14, 0], sizes = [2, 64], strides = [1, 1]} : vector<16x64xf32> to vector<2x64xf32>
    %cst_23 = arith.constant dense<0.000000e+00> : vector<2x64xf32>
    %143 = tpu.matmul %141, %6, %cst_23 {dimension_numbers = #tpu.dot_dimension_numbers<[1], [0], [0], [1], [0, 0, 1, 1], [], []>} : vector<2x16xf32>, vector<16x64xf32>, vector<2x64xf32> -> vector<2x64xf32>
    %144 = arith.addf %142, %143 : vector<2x64xf32>
    %145 = vector.extract_strided_slice %144 {offsets = [0, 0], sizes = [2, 48], strides = [1, 1]} : vector<2x64xf32> to vector<2x48xf32>
    %146 = arith.negf %145 : vector<2x48xf32>
    %147 = math.exp %146 : vector<2x48xf32>
    %cst_24 = arith.constant 1.000000e+00 : f32
    %148 = vector.broadcast %cst_24 : f32 to vector<2x48xf32>
    %149 = arith.addf %148, %147 : vector<2x48xf32>
    %150 = arith.divf %148, %149 : vector<2x48xf32>
    %151 = vector.extract_strided_slice %144 {offsets = [0, 48], sizes = [2, 16], strides = [1, 1]} : vector<2x64xf32> to vector<2x16xf32>
    %152 = math.tanh %151 : vector<2x16xf32>
    %153 = vector.extract_strided_slice %150 {offsets = [0, 0], sizes = [2, 16], strides = [1, 1]} : vector<2x48xf32> to vector<2x16xf32>
    %154 = vector.extract_strided_slice %150 {offsets = [0, 16], sizes = [2, 16], strides = [1, 1]} : vector<2x48xf32> to vector<2x16xf32>
    %155 = vector.extract_strided_slice %150 {offsets = [0, 32], sizes = [2, 16], strides = [1, 1]} : vector<2x48xf32> to vector<2x16xf32>
    %156 = arith.mulf %154, %139 : vector<2x16xf32>
    %157 = arith.mulf %153, %152 : vector<2x16xf32>
    %158 = arith.addf %156, %157 : vector<2x16xf32>
    %159 = math.tanh %158 : vector<2x16xf32>
    %160 = arith.mulf %155, %159 : vector<2x16xf32>
    %161 = tpu.iota {dimensions = array<i32: 1>} : vector<2x16xi32>
    %c8_i32 = arith.constant 8 : i32
    %162 = vector.broadcast %c8_i32 : i32 to vector<2x16xi32>
    %163 = arith.cmpi slt, %161, %162 : vector<2x16xi32>
    %164 = arith.select %163, %27, %160 : vector<2x16xi1>, vector<2x16xf32>
    %165 = arith.select %163, %46, %141 : vector<2x16xi1>, vector<2x16xf32>
    %166 = arith.select %163, %65, %122 : vector<2x16xi1>, vector<2x16xf32>
    %167 = arith.select %163, %84, %103 : vector<2x16xi1>, vector<2x16xf32>
    %168 = arith.select %163, %103, %84 : vector<2x16xi1>, vector<2x16xf32>
    %169 = arith.select %163, %122, %65 : vector<2x16xi1>, vector<2x16xf32>
    %170 = arith.select %163, %141, %46 : vector<2x16xi1>, vector<2x16xf32>
    %171 = arith.select %163, %160, %27 : vector<2x16xi1>, vector<2x16xf32>
    %172 = vector.shape_cast %164 : vector<2x16xf32> to vector<1x2x16xf32>
    %173 = vector.shape_cast %165 : vector<2x16xf32> to vector<1x2x16xf32>
    %174 = vector.shape_cast %166 : vector<2x16xf32> to vector<1x2x16xf32>
    %175 = vector.shape_cast %167 : vector<2x16xf32> to vector<1x2x16xf32>
    %176 = vector.shape_cast %168 : vector<2x16xf32> to vector<1x2x16xf32>
    %177 = vector.shape_cast %169 : vector<2x16xf32> to vector<1x2x16xf32>
    %178 = vector.shape_cast %170 : vector<2x16xf32> to vector<1x2x16xf32>
    %179 = vector.shape_cast %171 : vector<2x16xf32> to vector<1x2x16xf32>
    %180 = tpu.concatenate %172, %173, %174, %175, %176, %177, %178, %179 in 0 : vector<1x2x16xf32>, vector<1x2x16xf32>, vector<1x2x16xf32>, vector<1x2x16xf32>, vector<1x2x16xf32>, vector<1x2x16xf32>, vector<1x2x16xf32>, vector<1x2x16xf32> -> vector<8x2x16xf32>
    %c0_25 = arith.constant 0 : index
    %c0_26 = arith.constant 0 : index
    %c0_27 = arith.constant 0 : index
    %181 = vector.load %arg4[%c0_25, %c0_26, %c0_27] : memref<8x2x16xf32, #tpu.memory_space<vmem>>, vector<8x2x16xf32>
    tpu.vector_store %arg4[%c0_25, %c0_26, %c0_27], %180 {strides = array<i32>} : memref<8x2x16xf32, #tpu.memory_space<vmem>>, vector<8x2x16xf32>,
    return
  }
}

</mosaic_0001>

<bundles_post_ra>
// kernel: feature_extractor1.1
= control target key start
LH: loop header
LB: loop body
LE: loop exit
PB: predicated region body
PF: predicated region fallthrough
CT: control target
= control target key end

     0   :  { %vm30_vm0 = vcmask 261120   ;;  %v1177_v2 = vmov 0.0   ;;  %vm1178_vm1 = vmmov 0   ;;  %s1181_s5 = smov 96   ;;  %vm114_vm2 = vcmask 130048   ;;  %s1406_s1 = inlined_call_operand.vmem [shape: f32[32,64], index: 1, kind: input, shape index: {}]   ;;  %s1407_s0 = inlined_call_operand.vmem [shape: f32[16,32], index: 0, kind: input, shape index: {}]   ;;  %s1408_s3 = inlined_call_operand.vmem [shape: f32[16,64], index: 3, kind: input, shape index: {}]   ;;  %s1409_s2 = inlined_call_operand.vmem [shape: f32[1,64], index: 2, kind: input, shape index: {}]   ;;  %s1410_s4 = inlined_call_operand.vmem [shape: f32[8,2,16], index: 4, kind: output, shape index: {}]  }
   0x1   :  { %v22_v0 = vld [vmem:[%s1406_s1 + $0x18] sm:$0xff]  ;;  %v21_v1 = vld [vmem:[%s1406_s1 + $0x10] sm:$0xff]  ;;  %1052 = vmatprep.subr.mxu1 %v1177_v2  ;;  %1056 = vmatprep.mubr.msk.f32.mxu1 %vm1178_vm1, %v1177_v2  ;;  %v17_v3 = vld [vmem:[%s1407_s0] sm:$0xff]  ;;  %vm980_vm4 = vcmask 123904  }
   0x2   :  { %1041 = vmatprep.subr.mxu0 %v22_v0  ;;  %v20_v4 = vld [vmem:[%s1406_s1 + $0x8] sm:$0xff]  ;;  %1049 = vmatprep.mubr.msk.f32.mxu0 %vm30_vm0, %v17_v3  ;;  %v1231_v6 = vld [vmem:[%s1408_s3] sm:$0xff] }
   0x3   :  { %1042 = vmatpush3.msra.mxu0 %v22_v0  ;;  %v1226_v5 = vld [vmem:[%s1408_s3 + $0x8] sm:$0xff]  ;;  %v19_v7 = vld [vmem:[%s1406_s1] sm:$0xff]  ;;  %s1179_s3 = smov 80  }
   0x4   :  { %1043 = vmatprep.subr.mxu0 %v21_v1  ;;  %1053 = vmatpush3.msra.mxu1 %v1226_v5  ;;  %v18_v8 = vld [vmem:[%s1407_s0 + $0x8] sm:$0xff]  ;;  %v993_v10 = vld [vmem:[%s1409_s2] ss:$0 sm:$0xff]  ;;  %s1180_s2 = smov 16  }
   0x5   :  { %1044 = vmatpush3.msra.mxu0 %v21_v1  ;;  %1054 = vmatprep.subr.mxu1 %v1177_v2 }
   0x6   :  { %1045 = vmatprep.subr.mxu0 %v20_v4  ;;  %1055 = vmatpush3.msra.mxu1 %v1231_v6 }
   0x7   :  { %1046 = vmatpush3.msra.mxu0 %v20_v4  ;;  %1057 = vmatmul.mubr.f32.vlgmr.msra.gmra.mxu1 %v1177_v2 }
   0x8   :  { %1047 = vmatprep.subr.mxu0 %v19_v7  ;;  %1059 = vmatprep.subr.mxu1 %v1177_v2 }
   0x9   :  { %1048 = vmatpush3.msra.mxu0 %v19_v7  ;;  %1060 = vmatpush3.msra.mxu1 %v1226_v5 }
   0xa   :  { %1050 = vmatmul.mubr.msk.f32.vlgmr.msra.gmra.mxu0 %vm30_vm0, %v18_v8  ;;  %1061 = vmatprep.subr.mxu1 %v1177_v2 }
   0xb   :  { %1062 = vmatpush3.msra.mxu1 %v1231_v6  ;;  %1063 = vmatprep.mubr.msk.f32.mxu1 %vm1178_vm1, %v1177_v2 }
   0xc   :  { %1066 = vmatprep.subr.mxu0 %v1177_v2  ;;  %1070 = vmatprep.mubr.msk.f32.mxu0 %vm1178_vm1, %v1177_v2 }
   0xd   :  { %1067 = vmatpush3.msra.mxu0 %v1226_v5  ;;  %1073 = vmatprep.subr.mxu1 %v1177_v2 }
   0xe   :  { %1068 = vmatprep.subr.mxu0 %v1177_v2 }
   0xf   :  { %1069 = vmatpush3.msra.mxu0 %v1231_v6 }
  0x10   :  { %1080 = vmatprep.subr.mxu0 %v1177_v2 }
  0xc7   :  { %v184_v9 = vpop.f32.mrf.mxu1 }
  0xc9   :  { %v1058_v11 = vpop.f32.mrf.mxu1 }
  0xca   :  { %v1051_v12 = vpop.f32.mrf.mxu0 }
  0xcb   :  { %v1261_v13 = vadd.f32 %v1051_v12, %v993_v10 }
  0xcc   :  { %v103_v14 = vpop.f32.mrf.mxu0 }
  0xcd   :  { %v1263_v15 = vadd.f32 %v993_v10, %v103_v14 }
  0xcf   :  { %v188_v16 = vadd.f32 %v184_v9, %v1263_v15 }
  0xd1   :  { %1113 = vtanh.f32 %v188_v16  ;;  %v996_v18 = vmul.f32 -1.442695, %v188_v16 }
  0xd3   :  { %1115 = vpow2.f32 %v996_v18 }
  0xde   :  { %v1114_v17 = vpop.eup %1113 }
  0xdf   :  { %198 = vrot.lane.b32.xlu0 %v1114_v17, %s1179_s3 }
  0xe0   :  { %v1116_v19 = vpop.eup %1115 }
  0xe1   :  { %v192_v20 = vadd.f32 1.0, %v1116_v19 }
  0xe3   :  { %1117 = vrcp.f32 %v192_v20 }
  0xf0   :  { %v1118_v21 = vpop.eup %1117 }
  0xf1   :  { %v196_v24 = vmul.f32 0.0, %v1118_v21 }
 0x151   :  { %v199_v22 = vpop.permute.xlu0 %198 }
 0x152   :  { %v201_v23 = vmul.f32 %v1118_v21, %v199_v22 }
 0x154   :  { %203 = vrot.lane.b32.xlu0 %v201_v23, %s1180_s2 }
 0x1c6   :  { %v204_v25 = vpop.permute.xlu0 %203 }
 0x1c7   :  { %v206_v26 = vadd.f32 %v204_v25, %v196_v24 }
 0x1c9   :  { %1119 = vtanh.f32 %v206_v26  ;;  %v300_v42 = vrot.slane %v206_v26, 6 }
 0x1d6   :  { %v1120_v27 = vpop.eup %1119 }
 0x1d7   :  { %209 = vrot.lane.b32.xlu1 %v1120_v27, %s1180_s2 }
 0x249   :  { %v210_v28 = vpop.permute.xlu1 %209 }
 0x24a   :  { %v212_v29 = vmul.f32 %v1118_v21, %v210_v28 }
 0x24c   :  { %214 = vrot.lane.b32.xlu1 %v212_v29, %s1181_s5 }
 0x2be   :  { %v1270_v30 = vpop.permute.xlu1 %214 }
 0x2bf   :  { %1064 = vmatmul.mubr.msk.f32.vlgmr.msra.gmra.mxu1 %vm114_vm2, %v1270_v30 }
 0x2c0   :  { %1074 = vmatpush3.msra.mxu1 %v1226_v5  ;;  %1077 = vmatprep.mubr.msk.f32.mxu1 %vm1178_vm1, %v1177_v2 }
 0x2c1   :  { %1075 = vmatprep.subr.mxu1 %v1177_v2 }
 0x2c2   :  { %1076 = vmatpush3.msra.mxu1 %v1231_v6 }
 0x2c3   :  { %1087 = vmatprep.subr.mxu1 %v1177_v2 }
 0x37f   :  { %v284_v31 = vpop.f32.mrf.mxu1 }
 0x380   :  { %v289_v32 = vrot.slane %v284_v31, 6 }
 0x381   :  { %v1065_v33 = vpop.f32.mrf.mxu1 }
 0x382   :  { %v291_v34 = vadd.f32 %v289_v32, %v1263_v15 }
 0x384   :  { %1121 = vtanh.f32 %v291_v34  ;;  %v998_v36 = vmul.f32 -1.442695, %v291_v34 }
 0x386   :  { %1123 = vpow2.f32 %v998_v36 }
 0x391   :  { %v1122_v35 = vpop.eup %1121 }
 0x392   :  { %304 = vrot.lane.b32.xlu0 %v1122_v35, %s1179_s3 }
 0x393   :  { %v1124_v37 = vpop.eup %1123 }
 0x394   :  { %v295_v38 = vadd.f32 1.0, %v1124_v37 }
 0x396   :  { %1125 = vrcp.f32 %v295_v38 }
 0x3a3   :  { %v1126_v39 = vpop.eup %1125 }
 0x3a4   :  { %v302_v43 = vmul.f32 %v1126_v39, %v300_v42 }
 0x404   :  { %v305_v40 = vpop.permute.xlu0 %304 }
 0x405   :  { %v307_v41 = vmul.f32 %v1126_v39, %v305_v40 }
 0x407   :  { %309 = vrot.lane.b32.xlu1 %v307_v41, %s1180_s2 }
 0x479   :  { %v310_v44 = vpop.permute.xlu1 %309 }
 0x47a   :  { %v312_v45 = vadd.f32 %v310_v44, %v302_v43 }
 0x47c   :  { %1127 = vtanh.f32 %v312_v45  ;;  %v407_v62 = vrot.slane %v312_v45, 6 }
 0x489   :  { %v1128_v46 = vpop.eup %1127 }
 0x48a   :  { %315 = vrot.lane.b32.xlu0 %v1128_v46, %s1180_s2 }
 0x4fc   :  { %v316_v47 = vpop.permute.xlu0 %315 }
 0x4fd   :  { %v318_v48 = vmul.f32 %v1126_v39, %v316_v47 }
 0x4ff   :  { %v320_v49 = vrot.slane %v318_v48, 2 }
 0x501   :  { %321 = vrot.lane.b32.xlu1 %v320_v49, %s1181_s5  ;;  %v957_v49 = vlaneseq }
 0x573   :  { %v1285_v50 = vpop.permute.xlu1 %321 }
 0x574   :  { %1071 = vmatmul.mubr.msk.f32.vlgmr.msra.gmra.mxu0 %vm114_vm2, %v1285_v50 }
 0x575   :  { %1081 = vmatpush3.msra.mxu0 %v1226_v5  ;;  %1084 = vmatprep.mubr.msk.f32.mxu0 %vm1178_vm1, %v1177_v2 }
 0x576   :  { %1082 = vmatprep.subr.mxu0 %v1177_v2 }
 0x577   :  { %1083 = vmatpush3.msra.mxu0 %v1231_v6 }
 0x578   :  { %1094 = vmatprep.subr.mxu0 %v1177_v2 }
 0x634   :  { %v391_v51 = vpop.f32.mrf.mxu0 }
 0x635   :  { %v396_v52 = vrot.slane %v391_v51, 4  ;;  %v1326_v51 = vand.u32 127, %v957_v49 }
 0x636   :  { %v1072_v53 = vpop.f32.mrf.mxu0 }
 0x637   :  { %v398_v54 = vadd.f32 %v396_v52, %v1263_v15  ;;  %vm959_vm3 = vcmp.lt.s32.totalorder %v1326_v51, 8 }
 0x639   :  { %1129 = vtanh.f32 %v398_v54  ;;  %v1000_v56 = vmul.f32 -1.442695, %v398_v54 }
 0x63b   :  { %1131 = vpow2.f32 %v1000_v56 }
 0x646   :  { %v1130_v55 = vpop.eup %1129 }
 0x647   :  { %411 = vrot.lane.b32.xlu0 %v1130_v55, %s1179_s3 }
 0x648   :  { %v1132_v57 = vpop.eup %1131 }
 0x649   :  { %v402_v58 = vadd.f32 1.0, %v1132_v57 }
 0x64b   :  { %1133 = vrcp.f32 %v402_v58 }
 0x658   :  { %v1134_v59 = vpop.eup %1133 }
 0x659   :  { %v409_v63 = vmul.f32 %v1134_v59, %v407_v62 }
 0x6b9   :  { %v412_v60 = vpop.permute.xlu0 %411 }
 0x6ba   :  { %v414_v61 = vmul.f32 %v1134_v59, %v412_v60 }
 0x6bc   :  { %416 = vrot.lane.b32.xlu1 %v414_v61, %s1180_s2 }
 0x72e   :  { %v417_v0 = vpop.permute.xlu1 %416 }
 0x72f   :  { %v419_v1 = vadd.f32 %v417_v0, %v409_v63 }
 0x731   :  { %1135 = vtanh.f32 %v419_v1  ;;  %v514_v23 = vrot.slane %v419_v1, 6 }
 0x73e   :  { %v1136_v3 = vpop.eup %1135 }
 0x73f   :  { %422 = vrot.lane.b32.xlu0 %v1136_v3, %s1180_s2 }
 0x7b1   :  { %v423_v4 = vpop.permute.xlu0 %422 }
 0x7b2   :  { %v425_v7 = vmul.f32 %v1134_v59, %v423_v4 }
 0x7b4   :  { %v427_v8 = vrot.slane %v425_v7, 4 }
 0x7b6   :  { %428 = vrot.lane.b32.xlu1 %v427_v8, %s1181_s5 }
 0x828   :  { %v1300_v9 = vpop.permute.xlu1 %428 }
 0x829   :  { %1078 = vmatmul.mubr.msk.f32.vlgmr.msra.gmra.mxu1 %vm114_vm2, %v1300_v9 }
 0x82a   :  { %1088 = vmatpush3.msra.mxu1 %v1226_v5  ;;  %1091 = vmatprep.mubr.msk.f32.mxu1 %vm1178_vm1, %v1177_v2 }
 0x82b   :  { %1089 = vmatprep.subr.mxu1 %v1177_v2 }
 0x82c   :  { %1090 = vmatpush3.msra.mxu1 %v1231_v6 }
 0x82d   :  { %1101 = vmatprep.subr.mxu1 %v1177_v2 }
 0x8e9   :  { %v498_v10 = vpop.f32.mrf.mxu1 }
 0x8ea   :  { %v503_v11 = vrot.slane %v498_v10, 2 }
 0x8eb   :  { %v1079_v12 = vpop.f32.mrf.mxu1 }
 0x8ec   :  { %v505_v14 = vadd.f32 %v503_v11, %v1263_v15 }
 0x8ee   :  { %1137 = vtanh.f32 %v505_v14  ;;  %v1002_v17 = vmul.f32 -1.442695, %v505_v14 }
 0x8f0   :  { %1139 = vpow2.f32 %v1002_v17 }
 0x8fb   :  { %v1138_v16 = vpop.eup %1137 }
 0x8fc   :  { %518 = vrot.lane.b32.xlu0 %v1138_v16, %s1179_s3 }
 0x8fd   :  { %v1140_v18 = vpop.eup %1139 }
 0x8fe   :  { %v509_v19 = vadd.f32 1.0, %v1140_v18 }
 0x900   :  { %1141 = vrcp.f32 %v509_v19 }
 0x90d   :  { %v1142_v20 = vpop.eup %1141 }
 0x90e   :  { %v516_v24 = vmul.f32 %v1142_v20, %v514_v23 }
 0x96e   :  { %v519_v21 = vpop.permute.xlu0 %518 }
 0x96f   :  { %v521_v22 = vmul.f32 %v1142_v20, %v519_v21 }
 0x971   :  { %523 = vrot.lane.b32.xlu1 %v521_v22, %s1180_s2 }
 0x9e3   :  { %v524_v25 = vpop.permute.xlu1 %523 }
 0x9e4   :  { %v526_v26 = vadd.f32 %v524_v25, %v516_v24 }
 0x9e6   :  { %1143 = vtanh.f32 %v526_v26  ;;  %v618_v42 = vrot.slane %v526_v26, 6 }
 0x9f3   :  { %v1144_v15 = vpop.eup %1143 }
 0x9f4   :  { %529 = vrot.lane.b32.xlu0 %v1144_v15, %s1180_s2 }
 0xa66   :  { %v530_v27 = vpop.permute.xlu0 %529 }
 0xa67   :  { %v532_v28 = vmul.f32 %v1142_v20, %v530_v27 }
 0xa69   :  { %v534_v29 = vrot.slane %v532_v28, 6 }
 0xa6b   :  { %535 = vrot.lane.b32.xlu1 %v534_v29, %s1181_s5 }
 0xadd   :  { %v536_v31 = vpop.permute.xlu1 %535 }
 0xade   :  { %1085 = vmatmul.mubr.msk.f32.vlgmr.msra.gmra.mxu0 %vm114_vm2, %v536_v31 }
 0xadf   :  { %1095 = vmatpush3.msra.mxu0 %v1226_v5  ;;  %1098 = vmatprep.mubr.msk.f32.mxu0 %vm1178_vm1, %v1177_v2 }
 0xae0   :  { %1096 = vmatprep.subr.mxu0 %v1177_v2 }
 0xae1   :  { %1097 = vmatpush3.msra.mxu0 %v1231_v6 }
 0xb9e   :  { %v605_v32 = vpop.f32.mrf.mxu0 }
 0xb9f   :  { %v609_v33 = vadd.f32 %v605_v32, %v1261_v13 }
 0xba0   :  { %v1086_v34 = vpop.f32.mrf.mxu0 }
 0xba1   :  { %1145 = vtanh.f32 %v609_v33  ;;  %v1004_v36 = vmul.f32 -1.442695, %v609_v33 }
 0xba3   :  { %1147 = vpow2.f32 %v1004_v36 }
 0xbae   :  { %v1146_v35 = vpop.eup %1145 }
 0xbaf   :  { %622 = vrot.lane.b32.xlu0 %v1146_v35, %s1179_s3 }
 0xbb0   :  { %v1148_v37 = vpop.eup %1147 }
 0xbb1   :  { %v613_v38 = vadd.f32 1.0, %v1148_v37 }
 0xbb3   :  { %1149 = vrcp.f32 %v613_v38 }
 0xbc0   :  { %v1150_v39 = vpop.eup %1149 }
 0xbc1   :  { %v620_v43 = vmul.f32 %v1150_v39, %v618_v42 }
 0xc21   :  { %v623_v40 = vpop.permute.xlu0 %622 }
 0xc22   :  { %v625_v41 = vmul.f32 %v1150_v39, %v623_v40 }
 0xc24   :  { %627 = vrot.lane.b32.xlu1 %v625_v41, %s1180_s2 }
 0xc96   :  { %v628_v44 = vpop.permute.xlu1 %627 }
 0xc97   :  { %v630_v45 = vadd.f32 %v628_v44, %v620_v43 }
 0xc99   :  { %1151 = vtanh.f32 %v630_v45 }
 0xca6   :  { %v1152_v46 = vpop.eup %1151 }
 0xca7   :  { %633 = vrot.lane.b32.xlu0 %v1152_v46, %s1180_s2 }
 0xd19   :  { %v634_v47 = vpop.permute.xlu0 %633 }
 0xd1a   :  { %v636_v48 = vmul.f32 %v1150_v39, %v634_v47 }
 0xd1c   :  { %638 = vrot.lane.b32.xlu1 %v636_v48, %s1181_s5 }
 0xd8e   :  { %v639_v52 = vpop.permute.xlu1 %638 }
 0xd8f   :  { %v975_v53 = vsel %vm959_vm3, %v536_v31, %v639_v52  ;;  %v976_v54 = vsel %vm959_vm3, %v639_v52, %v536_v31  ;;  %1092 = vmatmul.mubr.msk.f32.vlgmr.msra.gmra.mxu1 %vm114_vm2, %v639_v52 }
 0xd90   :  { %984 = vst.msk [vmem:[%s1410_s4 + $0x6] sm:$0x3] %vm980_vm4, %v975_v53  ;;  %985 = vst.msk [vmem:[%s1410_s4 + $0x8] sm:$0x3] %vm980_vm4, %v976_v54  ;;  %1102 = vmatpush3.msra.mxu1 %v1226_v5  ;;  %1105 = vmatprep.mubr.msk.f32.mxu1 %vm1178_vm1, %v1177_v2 }
 0xd91   :  { %1103 = vmatprep.subr.mxu1 %v1177_v2  ;;  %v724_v2 = vrot.slane %v630_v45, 6 }
 0xd92   :  { %1104 = vmatpush3.msra.mxu1 %v1231_v6 }
 0xe4f   :  { %v708_v55 = vpop.f32.mrf.mxu1 }
 0xe50   :  { %v713_v56 = vrot.slane %v708_v55, 6 }
 0xe51   :  { %v1093_v57 = vpop.f32.mrf.mxu1 }
 0xe52   :  { %v715_v58 = vadd.f32 %v713_v56, %v1261_v13 }
 0xe54   :  { %1153 = vtanh.f32 %v715_v58  ;;  %v1006_v60 = vmul.f32 -1.442695, %v715_v58 }
 0xe56   :  { %1155 = vpow2.f32 %v1006_v60 }
 0xe61   :  { %v1154_v59 = vpop.eup %1153 }
 0xe62   :  { %728 = vrot.lane.b32.xlu0 %v1154_v59, %s1179_s3 }
 0xe63   :  { %v1156_v61 = vpop.eup %1155 }
 0xe64   :  { %v719_v5 = vadd.f32 1.0, %v1156_v61 }
 0xe66   :  { %1157 = vrcp.f32 %v719_v5 }
 0xe73   :  { %v1158_v62 = vpop.eup %1157 }
 0xe74   :  { %v726_v6 = vmul.f32 %v1158_v62, %v724_v2 }
 0xed4   :  { %v729_v63 = vpop.permute.xlu0 %728 }
 0xed5   :  { %v731_v0 = vmul.f32 %v1158_v62, %v729_v63 }
 0xed7   :  { %733 = vrot.lane.b32.xlu1 %v731_v0, %s1180_s2 }
 0xf49   :  { %v734_v1 = vpop.permute.xlu1 %733 }
 0xf4a   :  { %v736_v3 = vadd.f32 %v734_v1, %v726_v6 }
 0xf4c   :  { %1159 = vtanh.f32 %v736_v3  ;;  %v831_v26 = vrot.slane %v736_v3, 6 }
 0xf59   :  { %v1160_v4 = vpop.eup %1159 }
 0xf5a   :  { %739 = vrot.lane.b32.xlu0 %v1160_v4, %s1180_s2 }
 0xfcc   :  { %v740_v7 = vpop.permute.xlu0 %739 }
 0xfcd   :  { %v742_v8 = vmul.f32 %v1158_v62, %v740_v7 }
 0xfcf   :  { %v744_v10 = vrot.slane %v742_v8, 2 }
 0xfd1   :  { %745 = vrot.lane.b32.xlu1 %v744_v10, %s1181_s5 }
0x1043   :  { %v746_v11 = vpop.permute.xlu1 %745 }
0x1044   :  { %v972_v12 = vsel %vm959_vm3, %v1300_v9, %v746_v11  ;;  %v977_v14 = vsel %vm959_vm3, %v746_v11, %v1300_v9  ;;  %1099 = vmatmul.mubr.msk.f32.vlgmr.msra.gmra.mxu0 %vm114_vm2, %v746_v11 }
0x1045   :  { %983 = vst.msk [vmem:[%s1410_s4 + $0x4] sm:$0x3] %vm980_vm4, %v972_v12  ;;  %986 = vst.msk [vmem:[%s1410_s4 + $0xa] sm:$0x3] %vm980_vm4, %v977_v14 }
0x1104   :  { %v815_v16 = vpop.f32.mrf.mxu0 }
0x1105   :  { %v820_v17 = vrot.slane %v815_v16, 4 }
0x1106   :  { %v1100_v18 = vpop.f32.mrf.mxu0 }
0x1107   :  { %v822_v19 = vadd.f32 %v820_v17, %v1261_v13 }
0x1109   :  { %1161 = vtanh.f32 %v822_v19  ;;  %v1008_v9 = vmul.f32 -1.442695, %v822_v19 }
0x110b   :  { %1163 = vpow2.f32 %v1008_v9 }
0x1116   :  { %v1162_v20 = vpop.eup %1161 }
0x1117   :  { %835 = vrot.lane.b32.xlu0 %v1162_v20, %s1179_s3 }
0x1118   :  { %v1164_v21 = vpop.eup %1163 }
0x1119   :  { %v826_v22 = vadd.f32 1.0, %v1164_v21 }
0x111b   :  { %1165 = vrcp.f32 %v826_v22 }
0x1128   :  { %v1166_v23 = vpop.eup %1165 }
0x1129   :  { %v833_v15 = vmul.f32 %v1166_v23, %v831_v26 }
0x1189   :  { %v836_v24 = vpop.permute.xlu0 %835 }
0x118a   :  { %v838_v25 = vmul.f32 %v1166_v23, %v836_v24 }
0x118c   :  { %840 = vrot.lane.b32.xlu1 %v838_v25, %s1180_s2 }
0x11fe   :  { %v841_v27 = vpop.permute.xlu1 %840 }
0x11ff   :  { %v843_v28 = vadd.f32 %v841_v27, %v833_v15 }
0x1201   :  { %1167 = vtanh.f32 %v843_v28  ;;  %v938_v47 = vrot.slane %v843_v28, 6 }
0x120e   :  { %v1168_v29 = vpop.eup %1167 }
0x120f   :  { %846 = vrot.lane.b32.xlu0 %v1168_v29, %s1180_s2 }
0x1281   :  { %v847_v31 = vpop.permute.xlu0 %846 }
0x1282   :  { %v849_v32 = vmul.f32 %v1166_v23, %v847_v31 }
0x1284   :  { %v851_v33 = vrot.slane %v849_v32, 4 }
0x1286   :  { %852 = vrot.lane.b32.xlu1 %v851_v33, %s1181_s5 }
0x12f8   :  { %v853_v34 = vpop.permute.xlu1 %852 }
0x12f9   :  { %v969_v35 = vsel %vm959_vm3, %v1285_v50, %v853_v34  ;;  %v978_v36 = vsel %vm959_vm3, %v853_v34, %v1285_v50  ;;  %1106 = vmatmul.mubr.msk.f32.vlgmr.msra.gmra.mxu1 %vm114_vm2, %v853_v34 }
0x12fa   :  { %982 = vst.msk [vmem:[%s1410_s4 + $0x2] sm:$0x3] %vm980_vm4, %v969_v35  ;;  %987 = vst.msk [vmem:[%s1410_s4 + $0xc] sm:$0x3] %vm980_vm4, %v978_v36 }
0x13b9   :  { %v922_v37 = vpop.f32.mrf.mxu1 }
0x13ba   :  { %v927_v38 = vrot.slane %v922_v37, 2 }
0x13bb   :  { %v1107_v39 = vpop.f32.mrf.mxu1 }
0x13bc   :  { %v929_v40 = vadd.f32 %v927_v38, %v1261_v13 }
0x13be   :  { %1169 = vtanh.f32 %v929_v40  ;;  %v1010_v50 = vmul.f32 -1.442695, %v929_v40 }
0x13c0   :  { %1171 = vpow2.f32 %v1010_v50 }
0x13cb   :  { %v1170_v41 = vpop.eup %1169 }
0x13cc   :  { %942 = vrot.lane.b32.xlu0 %v1170_v41, %s1179_s3 }
0x13cd   :  { %v1172_v42 = vpop.eup %1171 }
0x13ce   :  { %v933_v43 = vadd.f32 1.0, %v1172_v42 }
0x13d0   :  { %1173 = vrcp.f32 %v933_v43 }
0x13dd   :  { %v1174_v44 = vpop.eup %1173 }
0x13de   :  { %v940_v48 = vmul.f32 %v1174_v44, %v938_v47 }
0x143e   :  { %v943_v45 = vpop.permute.xlu0 %942 }
0x143f   :  { %v945_v46 = vmul.f32 %v1174_v44, %v943_v45 }
0x1441   :  { %947 = vrot.lane.b32.xlu1 %v945_v46, %s1180_s2 }
0x14b3   :  { %v948_v49 = vpop.permute.xlu1 %947 }
0x14b4   :  { %v950_v52 = vadd.f32 %v948_v49, %v940_v48 }
0x14b6   :  { %1175 = vtanh.f32 %v950_v52 }
0x14c3   :  { %v1176_v13 = vpop.eup %1175 }
0x14c4   :  { %953 = vrot.lane.b32.xlu0 %v1176_v13, %s1180_s2 }
0x1536   :  { %v954_v53 = vpop.permute.xlu0 %953 }
0x1537   :  { %v956_v54 = vmul.f32 %v1174_v44, %v954_v53 }
0x1539   :  { %v962_v55 = vrot.slane %v956_v54, 6 }
0x153b   :  { %963 = vrot.lane.b32.xlu1 %v962_v55, %s1181_s5 }
0x15ad   :  { %v964_v56 = vpop.permute.xlu1 %963 }
0x15ae   :  { %v966_v57 = vsel %vm959_vm3, %v1270_v30, %v964_v56  ;;  %v979_v58 = vsel %vm959_vm3, %v964_v56, %v1270_v30 }
0x15af   :  { %981 = vst.msk [vmem:[%s1410_s4] sm:$0x3] %vm980_vm4, %v966_v57  ;;  %988 = vst.msk [vmem:[%s1410_s4 + $0xe] sm:$0x3] %vm980_vm4, %v979_v58 }

</bundles_post_ra>
